<compile_context>
chip_gen: v6e
topology: v6e:2x2x1
jax: 0.10.0
libtpu: 0.0.40
codegen_flags: <defaults>
</compile_context>

<pallas_src>
import functools

import jax
import jax.numpy as jnp
from jax import lax
from jax.experimental import pallas as pl
from jax.experimental.pallas import tpu as pltpu
import numpy as np

EPS = 1e-5   # nn.BatchNorm2d default eps
K = 3        # conv kernel size


def dense_layer_kernel(x_ref, top_ref, bot_ref, scale_ref, shift_ref, w_ref,
                       out_ref, *, W, TH, T):
    # x_ref:     (1, C, TH*W)   row tile of one image, spatial flattened
    # top_ref:   (1, C, HC)     128-lane chunk just above the tile (halo row)
    # bot_ref:   (1, C, HC)     128-lane chunk just below the tile (halo row)
    # scale_ref: (C, 1)         fused BN scale = gamma / sqrt(var + eps)
    # shift_ref: (C, 1)         fused BN shift = beta - mean * scale
    # w_ref:     (3, G, 3*C)    conv weight, bf16, [kh][g, kw*C + c]
    # out_ref:   (1, C+G, TH*W) concatenated output tile (NCHW, flattened)
    C = x_ref.shape[1]
    LPT = TH * W                    # lanes per tile
    HC = top_ref.shape[2]           # halo chunk width (multiple of 128, >= W)
    MEXT = LPT + 2 * W
    t = pl.program_id(1)

    scale = scale_ref[...]          # (C, 1)
    shift = shift_ref[...]          # (C, 1)

    # BatchNorm (fused affine) + ReLU on the tile body; f32 on the VPU.
    x = x_ref[0]                                                 # (C, LPT)
    act_mid = jnp.maximum(x * scale + shift, 0.0)

    if T > 1:
        # +/-1 halo rows: last row of the tile above / first row of the tile
        # below.  Zeroed at the image top/bottom, because conv padding=1
        # zero-pads the *activation* (post BN+ReLU).
        act_top = jnp.maximum(top_ref[0, :, HC - W:] * scale + shift, 0.0)
        act_bot = jnp.maximum(bot_ref[0, :, :W] * scale + shift, 0.0)
        act_top = jnp.where(t > 0, act_top, jnp.zeros_like(act_top))
        act_bot = jnp.where(t < T - 1, act_bot, jnp.zeros_like(act_bot))
    else:
        act_top = jnp.zeros((C, W), jnp.float32)
        act_bot = jnp.zeros((C, W), jnp.float32)

    # Extended activation: image rows [t*TH - 1, t*TH + TH], W columns each.
    act_ext = jnp.concatenate([act_top, act_mid, act_bot], axis=1)  # (C, MEXT)

    # Only the 3 horizontal taps (2 XLU lane rolls, down from 8); each tap is
    # cast to bf16 as it is produced, so no f32 im2col + bf16 copy coexists.
    col = lax.broadcasted_iota(jnp.int32, (1, MEXT), 1) % W
    taps = []
    for kw in range(K):
        dw = kw - 1
        tap = act_ext if dw == 0 else pltpu.roll(act_ext, (-dw) % MEXT, axis=1)
        if dw < 0:
            tap = jnp.where(col >= -dw, tap, 0.0)
        elif dw > 0:
            tap = jnp.where(col < W - dw, tap, 0.0)
        taps.append(tap.astype(jnp.bfloat16))
    h_taps = jnp.concatenate(taps, axis=0)                       # (3C, MEXT)

    # One MXU matmul per filter row; accumulate the row-shifted slices.
    conv = None
    for kh in range(K):
        part = jnp.dot(w_ref[kh], h_taps,
                       preferred_element_type=jnp.float32)       # (G, MEXT)
        sl = part[:, kh * W: kh * W + LPT]                       # (G, LPT)
        conv = sl if conv is None else conv + sl

    # Dense connection (torch.cat([x, out], dim=1)).
    if C % 8 == 0:
        # Two direct lane-dense stores, no (C+G, M) concatenate temporary.
        out_ref[0, :C, :] = x.astype(out_ref.dtype)
        out_ref[0, C:, :] = conv.astype(out_ref.dtype)
    else:
        out_ref[0] = jnp.concatenate(
            [x.astype(out_ref.dtype), conv.astype(out_ref.dtype)], axis=0)


def _pick_row_tile(H, W, hc, max_lanes=2048):
    """Largest divisor of H whose row tile is halo-chunk aligned and <= max_lanes."""
    best = None
    for th in range(1, H + 1):
        if H % th:
            continue
        lpt = th * W
        if lpt % hc == 0 and lpt <= max_lanes:
            best = th
    return best


def dense_layer_forward(x_nchw, gamma, beta, w_oihw, *, row_tile=None):
    """DenseLayer forward. x_nchw: (N, C, H, W) -> (N, C+G, H, W)."""
    N, C, H, W = x_nchw.shape
    G = w_oihw.shape[0]
    M = H * W

    # Training-mode BatchNorm2d: batch stats over (N,H,W), biased variance.
    # (Second HBM pass over x; acknowledged per perf review.)
    mean = jnp.mean(x_nchw, axis=(0, 2, 3))
    var = jnp.var(x_nchw, axis=(0, 2, 3))
    scale = gamma / jnp.sqrt(var + EPS)
    shift = beta - mean * scale

    hc_min = 128 * ((W + 127) // 128)   # halo chunk width (multiple of 128)

    def _valid(th):
        return H % th == 0 and (th == H or (th * W) % hc_min == 0)

    if row_tile is None or not _valid(row_tile):
        row_tile = _pick_row_tile(H, W, hc_min)
        if row_tile is None:
            row_tile = H                 # fallback: one whole image per step
    TH = row_tile
    T = H // TH
    LPT = TH * W
    HC = hc_min if hc_min <= M else M    # halo chunk block width

    x_flat = x_nchw.reshape(N, C, M)     # free: NCHW is contiguous
    # (G, C, 3, 3) -> (kh, g, kw, c) -> (3, G, 3C); bf16 once for the MXU.
    w_mat = jnp.transpose(w_oihw, (2, 0, 3, 1)).reshape(K, G, K * C)
    w_mat = w_mat.astype(jnp.bfloat16)

    if T > 1:
        cpb = LPT // HC                  # halo chunks per tile (exact)
        nchunk = M // HC
        top_map = lambda n, t: (n, 0, jnp.maximum(t * cpb - 1, 0))
        bot_map = lambda n, t: (n, 0, jnp.minimum((t + 1) * cpb, nchunk - 1))
    else:
        top_map = lambda n, t: (n, 0, 0)
        bot_map = lambda n, t: (n, 0, 0)

    kernel = functools.partial(dense_layer_kernel, W=W, TH=TH, T=T)

    # Scoped-VMEM limit sized to the real per-step footprint (+ headroom).
    mext = LPT + 2 * W
    itemsize = jnp.dtype(x_nchw.dtype).itemsize
    est = (2 * (C * LPT + 2 * C * HC) * 4          # double-buffered x + halos
           + 2 * (C + G) * LPT * itemsize          # double-buffered output
           + 2 * C * mext * 4                      # act_ext + roll temp (f32)
           + 3 * C * mext * 2                      # bf16 taps
           + 2 * G * mext * 4                      # matmul partial + accum
           + K * G * K * C * 2 + 4 * C * 4)
    vmem_limit = int(min(64 * 1024 * 1024, max(2 * est + (4 << 20), 16 << 20)))

    out_flat = pl.pallas_call(
        kernel,
        out_shape=jax.ShapeDtypeStruct((N, C + G, M), x_nchw.dtype),
        grid_spec=pltpu.PrefetchScalarGridSpec(
            num_scalar_prefetch=0,
            grid=(N, T),
            in_specs=[
                pl.BlockSpec((1, C, LPT), lambda n, t: (n, 0, t)),
                pl.BlockSpec((1, C, HC), top_map),
                pl.BlockSpec((1, C, HC), bot_map),
                pl.BlockSpec((C, 1), lambda n, t: (0, 0)),
                pl.BlockSpec((C, 1), lambda n, t: (0, 0)),
                pl.BlockSpec((K, G, K * C), lambda n, t: (0, 0, 0)),
            ],
            out_specs=pl.BlockSpec((1, C + G, LPT), lambda n, t: (n, 0, t)),
        ),
        compiler_params=pltpu.CompilerParams(
            dimension_semantics=("parallel", "parallel"),
            vmem_limit_bytes=vmem_limit),
    )(x_flat, x_flat, x_flat, scale.reshape(C, 1), shift.reshape(C, 1), w_mat)

    return out_flat.reshape(N, C + G, H, W)


def ref_forward(x_nchw, gamma, beta, w_oihw):
    """Pure-JAX reference mirroring the PyTorch forward."""
    mean = jnp.mean(x_nchw, axis=(0, 2, 3), keepdims=True)
    var = jnp.var(x_nchw, axis=(0, 2, 3), keepdims=True)
    xhat = (x_nchw - mean) / jnp.sqrt(var + EPS)
    y = jnp.maximum(gamma.reshape(1, -1, 1, 1) * xhat
                    + beta.reshape(1, -1, 1, 1), 0.0)
    out = lax.conv_general_dilated(
        y, w_oihw, window_strides=(1, 1), padding="SAME",
        dimension_numbers=("NCHW", "OIHW", "NCHW"))
    return jnp.concatenate([x_nchw, out], axis=1)


if __name__ == "__main__":
    def run_case(N, C, H, W, G, row_tile):
        key = jax.random.PRNGKey(0)
        kx, kw = jax.random.split(key)
        x = jax.random.normal(kx, (N, C, H, W), dtype=jnp.float32)
        gamma = jnp.ones((C,), jnp.float32)      # BatchNorm2d weight default
        beta = jnp.zeros((C,), jnp.float32)      # BatchNorm2d bias default
        bound = 1.0 / np.sqrt(C * K * K)         # Conv2d kaiming-uniform bound
        w = jax.random.uniform(kw, (G, C, K, K), jnp.float32, -bound, bound)

        out = dense_layer_forward(x, gamma, beta, w, row_tile=row_tile)
        out = jax.block_until_ready(out)
        ref = ref_forward(x, gamma, beta, w)
        np.testing.assert_allclose(np.asarray(out), np.asarray(ref),
                                   rtol=2e-2, atol=2e-2)
        assert out.shape == (N, C + G, H, W)

    # Multi-row-tile path (row halo exercised): 2 tiles of 8 rows = 128 lanes.
    run_case(N=2, C=4, H=16, W=16, G=8, row_tile=8)
    # Auto tile (single tile per image) + C % 8 == 0 direct-store path.
    run_case(N=2, C=8, H=16, W=16, G=8, row_tile=None)

    print("KERNEL_OK")
</pallas_src>

<mosaic_0001>
module attributes {stable_mosaic.version = 11 : i64} {
  func.func @dense_layer_kernel(%arg0: i32, %arg1: i32, %arg2: memref<1x4x128xf32, #tpu.memory_space<vmem>>, %arg3: memref<1x4x128xf32, #tpu.memory_space<vmem>>, %arg4: memref<1x4x128xf32, #tpu.memory_space<vmem>>, %arg5: memref<4x1xf32, #tpu.memory_space<vmem>>, %arg6: memref<4x1xf32, #tpu.memory_space<vmem>>, %arg7: memref<3x8x12xbf16, #tpu.memory_space<vmem>>, %arg8: memref<1x12x128xf32, #tpu.memory_space<vmem>>) attributes {dimension_semantics = [#tpu.dimension_semantics<parallel>, #tpu.dimension_semantics<parallel>], iteration_bounds = array<i64: 2, 2>, scalar_prefetch = 0 : i64, scratch_operands = 0 : i64, tpu.core_type = #tpu.core_type<tc>, window_params = [{transform_indices = @transform_0, window_bounds = array<i64: 1, 4, 128>}, {transform_indices = @transform_1, window_bounds = array<i64: 1, 4, 128>}, {transform_indices = @transform_2, window_bounds = array<i64: 1, 4, 128>}, {pipeline_mode = #tpu.pipeline_mode<synchronous>, transform_indices = @transform_3, window_bounds = array<i64: 4, 1>}, {pipeline_mode = #tpu.pipeline_mode<synchronous>, transform_indices = @transform_4, window_bounds = array<i64: 4, 1>}, {pipeline_mode = #tpu.pipeline_mode<synchronous>, transform_indices = @transform_5, window_bounds = array<i64: 3, 8, 12>}, {transform_indices = @transform_6, window_bounds = array<i64: 1, 12, 128>}]} {
    %c0 = arith.constant 0 : index
    %c0_0 = arith.constant 0 : index
    %0 = vector.load %arg5[%c0, %c0_0] : memref<4x1xf32, #tpu.memory_space<vmem>>, vector<4x1xf32>
    %c0_1 = arith.constant 0 : index
    %c0_2 = arith.constant 0 : index
    %1 = vector.load %arg6[%c0_1, %c0_2] : memref<4x1xf32, #tpu.memory_space<vmem>>, vector<4x1xf32>
    %c0_3 = arith.constant 0 : index
    %c0_4 = arith.constant 0 : index
    %c0_5 = arith.constant 0 : index
    %2 = vector.load %arg2[%c0_3, %c0_4, %c0_5] : memref<1x4x128xf32, #tpu.memory_space<vmem>>, vector<1x4x128xf32>
    %3 = vector.shape_cast %2 : vector<1x4x128xf32> to vector<4x128xf32>
    %4 = vector.broadcast %0 : vector<4x1xf32> to vector<4x128xf32>
    %5 = arith.mulf %3, %4 : vector<4x128xf32>
    %6 = vector.broadcast %1 : vector<4x1xf32> to vector<4x128xf32>
    %7 = arith.addf %5, %6 : vector<4x128xf32>
    %cst = arith.constant 0.000000e+00 : f32
    %8 = vector.broadcast %cst : f32 to vector<4x128xf32>
    %9 = arith.maximumf %7, %8 : vector<4x128xf32>
    %c0_6 = arith.constant 0 : index
    %c0_7 = arith.constant 0 : index
    %c112 = arith.constant 112 : index
    %10 = vector.load %arg3[%c0_6, %c0_7, %c112] : memref<1x4x128xf32, #tpu.memory_space<vmem>>, vector<1x4x16xf32>
    %11 = vector.shape_cast %10 : vector<1x4x16xf32> to vector<4x16xf32>
    %12 = vector.broadcast %0 : vector<4x1xf32> to vector<4x16xf32>
    %13 = arith.mulf %11, %12 : vector<4x16xf32>
    %14 = vector.broadcast %1 : vector<4x1xf32> to vector<4x16xf32>
    %15 = arith.addf %13, %14 : vector<4x16xf32>
    %cst_8 = arith.constant 0.000000e+00 : f32
    %16 = vector.broadcast %cst_8 : f32 to vector<4x16xf32>
    %17 = arith.maximumf %15, %16 : vector<4x16xf32>
    %c0_9 = arith.constant 0 : index
    %c0_10 = arith.constant 0 : index
    %c0_11 = arith.constant 0 : index
    %18 = vector.load %arg4[%c0_9, %c0_10, %c0_11] : memref<1x4x128xf32, #tpu.memory_space<vmem>>, vector<1x4x16xf32>
    %19 = vector.shape_cast %18 : vector<1x4x16xf32> to vector<4x16xf32>
    %20 = vector.broadcast %0 : vector<4x1xf32> to vector<4x16xf32>
    %21 = arith.mulf %19, %20 : vector<4x16xf32>
    %22 = vector.broadcast %1 : vector<4x1xf32> to vector<4x16xf32>
    %23 = arith.addf %21, %22 : vector<4x16xf32>
    %cst_12 = arith.constant 0.000000e+00 : f32
    %24 = vector.broadcast %cst_12 : f32 to vector<4x16xf32>
    %25 = arith.maximumf %23, %24 : vector<4x16xf32>
    %c0_i32 = arith.constant 0 : i32
    %26 = arith.cmpi sgt, %arg1, %c0_i32 : i32
    %cst_13 = arith.constant 0.000000e+00 : f32
    %27 = vector.broadcast %cst_13 : f32 to vector<4x16xf32>
    %28 = arith.select %26, %17, %27 : vector<4x16xf32>
    %c1_i32 = arith.constant 1 : i32
    %29 = arith.cmpi slt, %arg1, %c1_i32 : i32
    %cst_14 = arith.constant 0.000000e+00 : f32
    %30 = vector.broadcast %cst_14 : f32 to vector<4x16xf32>
    %31 = arith.select %29, %25, %30 : vector<4x16xf32>
    %32 = tpu.concatenate %28, %9, %31 in 1 : vector<4x16xf32>, vector<4x128xf32>, vector<4x16xf32> -> vector<4x160xf32>
    %33 = tpu.iota {dimensions = array<i32: 1>} : vector<1x160xi32>
    %c16_i32 = arith.constant 16 : i32
    %c0_i32_15 = arith.constant 0 : i32
    %34 = arith.cmpi eq, %c16_i32, %c0_i32_15 : i32
    %c1_i32_16 = arith.constant 1 : i32
    %35 = arith.select %34, %c1_i32_16, %c16_i32 : i32
    %36 = vector.broadcast %35 : i32 to vector<1x160xi32>
    %37 = arith.remsi %33, %36 : vector<1x160xi32>
    %c0_i32_17 = arith.constant 0 : i32
    %38 = vector.broadcast %c0_i32_17 : i32 to vector<1x160xi32>
    %39 = arith.cmpi ne, %37, %38 : vector<1x160xi32>
    %c0_i32_18 = arith.constant 0 : i32
    %40 = vector.broadcast %c0_i32_18 : i32 to vector<1x160xi32>
    %41 = arith.cmpi slt, %37, %40 : vector<1x160xi32>
    %c0_i32_19 = arith.constant 0 : i32
    %42 = arith.cmpi slt, %35, %c0_i32_19 : i32
    %43 = vector.broadcast %42 : i1 to vector<1x160xi1>
    %44 = vector.broadcast %43 : vector<1x160xi1> to vector<1x160xi1>
    %45 = arith.xori %41, %44 : vector<1x160xi1>
    %46 = arith.andi %45, %39 : vector<1x160xi1>
    %47 = vector.broadcast %35 : i32 to vector<1x160xi32>
    %48 = arith.addi %37, %47 : vector<1x160xi32>
    %49 = arith.select %46, %48, %37 : vector<1x160xi1>, vector<1x160xi32>
    %c1_i32_20 = arith.constant 1 : i32
    %50 = tpu.dynamic_rotate %32 by %c1_i32_20 dim 1 : vector<4x160xf32>, i32 -> vector<4x160xf32>
    %c1_i32_21 = arith.constant 1 : i32
    %51 = vector.broadcast %c1_i32_21 : i32 to vector<1x160xi32>
    %52 = arith.cmpi sge, %49, %51 : vector<1x160xi32>
    %cst_22 = arith.constant 0.000000e+00 : f32
    %53 = vector.shape_cast %52 : vector<1x160xi1> to vector<1x160xi1>
    %54 = vector.broadcast %53 : vector<1x160xi1> to vector<4x160xi1>
    %55 = vector.broadcast %cst_22 : f32 to vector<4x160xf32>
    %56 = arith.select %54, %50, %55 : vector<4x160xi1>, vector<4x160xf32>
    %57 = arith.truncf %56 : vector<4x160xf32> to vector<4x160xbf16>
    %58 = arith.truncf %32 : vector<4x160xf32> to vector<4x160xbf16>
    %c159_i32 = arith.constant 159 : i32
    %59 = tpu.dynamic_rotate %32 by %c159_i32 dim 1 : vector<4x160xf32>, i32 -> vector<4x160xf32>
    %c15_i32 = arith.constant 15 : i32
    %60 = vector.broadcast %c15_i32 : i32 to vector<1x160xi32>
    %61 = arith.cmpi slt, %49, %60 : vector<1x160xi32>
    %cst_23 = arith.constant 0.000000e+00 : f32
    %62 = vector.shape_cast %61 : vector<1x160xi1> to vector<1x160xi1>
    %63 = vector.broadcast %62 : vector<1x160xi1> to vector<4x160xi1>
    %64 = vector.broadcast %cst_23 : f32 to vector<4x160xf32>
    %65 = arith.select %63, %59, %64 : vector<4x160xi1>, vector<4x160xf32>
    %66 = arith.truncf %65 : vector<4x160xf32> to vector<4x160xbf16>
    %67 = tpu.concatenate %57, %58, %66 in 0 : vector<4x160xbf16>, vector<4x160xbf16>, vector<4x160xbf16> -> vector<12x160xbf16>
    %c0_24 = arith.constant 0 : index
    %c0_25 = arith.constant 0 : index
    %c0_26 = arith.constant 0 : index
    %68 = vector.load %arg7[%c0_24, %c0_25, %c0_26] : memref<3x8x12xbf16, #tpu.memory_space<vmem>>, vector<1x8x12xbf16>
    %69 = vector.shape_cast %68 : vector<1x8x12xbf16> to vector<8x12xbf16>
    %cst_27 = arith.constant dense<0.000000e+00> : vector<8x160xf32>
    %70 = tpu.matmul %69, %67, %cst_27 {dimension_numbers = #tpu.dot_dimension_numbers<[1], [0], [0], [1], [0, 0, 1, 1], [], []>} : vector<8x12xbf16>, vector<12x160xbf16>, vector<8x160xf32> -> vector<8x160xf32>
    %71 = vector.extract_strided_slice %70 {offsets = [0, 0], sizes = [8, 128], strides = [1, 1]} : vector<8x160xf32> to vector<8x128xf32>
    %c1 = arith.constant 1 : index
    %c0_28 = arith.constant 0 : index
    %c0_29 = arith.constant 0 : index
    %72 = vector.load %arg7[%c1, %c0_28, %c0_29] : memref<3x8x12xbf16, #tpu.memory_space<vmem>>, vector<1x8x12xbf16>
    %73 = vector.shape_cast %72 : vector<1x8x12xbf16> to vector<8x12xbf16>
    %cst_30 = arith.constant dense<0.000000e+00> : vector<8x160xf32>
    %74 = tpu.matmul %73, %67, %cst_30 {dimension_numbers = #tpu.dot_dimension_numbers<[1], [0], [0], [1], [0, 0, 1, 1], [], []>} : vector<8x12xbf16>, vector<12x160xbf16>, vector<8x160xf32> -> vector<8x160xf32>
    %75 = vector.extract_strided_slice %74 {offsets = [0, 16], sizes = [8, 128], strides = [1, 1]} : vector<8x160xf32> to vector<8x128xf32>
    %76 = arith.addf %71, %75 : vector<8x128xf32>
    %c2 = arith.constant 2 : index
    %c0_31 = arith.constant 0 : index
    %c0_32 = arith.constant 0 : index
    %77 = vector.load %arg7[%c2, %c0_31, %c0_32] : memref<3x8x12xbf16, #tpu.memory_space<vmem>>, vector<1x8x12xbf16>
    %78 = vector.shape_cast %77 : vector<1x8x12xbf16> to vector<8x12xbf16>
    %cst_33 = arith.constant dense<0.000000e+00> : vector<8x160xf32>
    %79 = tpu.matmul %78, %67, %cst_33 {dimension_numbers = #tpu.dot_dimension_numbers<[1], [0], [0], [1], [0, 0, 1, 1], [], []>} : vector<8x12xbf16>, vector<12x160xbf16>, vector<8x160xf32> -> vector<8x160xf32>
    %80 = vector.extract_strided_slice %79 {offsets = [0, 32], sizes = [8, 128], strides = [1, 1]} : vector<8x160xf32> to vector<8x128xf32>
    %81 = arith.addf %76, %80 : vector<8x128xf32>
    %82 = tpu.concatenate %3, %81 in 0 : vector<4x128xf32>, vector<8x128xf32> -> vector<12x128xf32>
    %c0_34 = arith.constant 0 : index
    %c0_35 = arith.constant 0 : index
    %c0_36 = arith.constant 0 : index
    %83 = vector.load %arg8[%c0_34, %c0_35, %c0_36] : memref<1x12x128xf32, #tpu.memory_space<vmem>>, vector<1x12x128xf32>
    %84 = vector.shape_cast %83 : vector<1x12x128xf32> to vector<12x128xf32>
    %85 = vector.shape_cast %82 : vector<12x128xf32> to vector<1x12x128xf32>
    tpu.vector_store %arg8[%c0_34, %c0_35, %c0_36], %85 {strides = array<i32>} : memref<1x12x128xf32, #tpu.memory_space<vmem>>, vector<1x12x128xf32>,
    return
  }
  func.func @transform_0(%arg0: i32, %arg1: i32) -> (i32, i32, i32) {
    %c0_i32 = arith.constant 0 : i32
    %c0_i32_0 = arith.constant 0 : i32
    return %arg0, %c0_i32, %arg1 : i32, i32, i32
  }
  func.func @transform_1(%arg0: i32, %arg1: i32) -> (i32, i32, i32) {
    %c1_i32 = arith.constant 1 : i32
    %0 = arith.muli %arg1, %c1_i32 : i32
    %c1_i32_0 = arith.constant 1 : i32
    %1 = arith.subi %0, %c1_i32_0 : i32
    %c0_i32 = arith.constant 0 : i32
    %2 = arith.maxsi %1, %c0_i32 : i32
    %c0_i32_1 = arith.constant 0 : i32
    %c0_i32_2 = arith.constant 0 : i32
    return %arg0, %c0_i32_1, %2 : i32, i32, i32
  }
  func.func @transform_2(%arg0: i32, %arg1: i32) -> (i32, i32, i32) {
    %c1_i32 = arith.constant 1 : i32
    %0 = arith.addi %arg1, %c1_i32 : i32
    %c1_i32_0 = arith.constant 1 : i32
    %1 = arith.muli %0, %c1_i32_0 : i32
    %c1_i32_1 = arith.constant 1 : i32
    %2 = arith.minsi %1, %c1_i32_1 : i32
    %c0_i32 = arith.constant 0 : i32
    %c0_i32_2 = arith.constant 0 : i32
    return %arg0, %c0_i32, %2 : i32, i32, i32
  }
  func.func @transform_3(%arg0: i32, %arg1: i32) -> (i32, i32) {
    %c0_i32 = arith.constant 0 : i32
    %c0_i32_0 = arith.constant 0 : i32
    %c0_i32_1 = arith.constant 0 : i32
    return %c0_i32, %c0_i32_0 : i32, i32
  }
  func.func @transform_4(%arg0: i32, %arg1: i32) -> (i32, i32) {
    %c0_i32 = arith.constant 0 : i32
    %c0_i32_0 = arith.constant 0 : i32
    %c0_i32_1 = arith.constant 0 : i32
    return %c0_i32, %c0_i32_0 : i32, i32
  }
  func.func @transform_5(%arg0: i32, %arg1: i32) -> (i32, i32, i32) {
    %c0_i32 = arith.constant 0 : i32
    %c0_i32_0 = arith.constant 0 : i32
    %c0_i32_1 = arith.constant 0 : i32
    %c0_i32_2 = arith.constant 0 : i32
    return %c0_i32, %c0_i32_0, %c0_i32_1 : i32, i32, i32
  }
  func.func @transform_6(%arg0: i32, %arg1: i32) -> (i32, i32, i32) {
    %c0_i32 = arith.constant 0 : i32
    %c0_i32_0 = arith.constant 0 : i32
    return %arg0, %c0_i32, %arg1 : i32, i32, i32
  }
}

</mosaic_0001>

<bundles_post_ra>
// kernel: tpu_custom_call.1
= control target key start
LH: loop header
LB: loop body
LE: loop exit
PB: predicated region body
PF: predicated region fallthrough
CT: control target
= control target key end

     0   :  { %s1646_s0 = inlined_call_operand.hbm [shape: f32[2,4,256], index: 0, kind: input, shape index: {}]   ;;  %s1647_s1 = inlined_call_operand.hbm [shape: f32[2,4,256], index: 1, kind: input, shape index: {}]   ;;  %s1648_s2 = inlined_call_operand.hbm [shape: f32[2,4,256], index: 2, kind: input, shape index: {}]   ;;  %s1649_s3 = inlined_call_operand.vmem [shape: f32[4,1], index: 3, kind: input, shape index: {}]   ;;  %s1650_s4 = inlined_call_operand.vmem [shape: f32[4,1], index: 4, kind: input, shape index: {}]   ;;  %s1651_s5 = inlined_call_operand.vmem [shape: bf16[3,8,12], index: 5, kind: input, shape index: {}]   ;;  %s1652_s6 = inlined_call_operand.vmem [shape: f32[2,12,256], index: 6, kind: output, shape index: {}]  }
   0x1   :  { %1668 = sst [smem:[#allocation18_spill]] %s1647_s1 }
   0x2   :  { %1669 = sst [smem:[#allocation19_spill]] %s1649_s3 }
   0x3   :  { %1670 = sst [smem:[#allocation20_spill]] %s1650_s4 }
   0x4   :  { %1671 = sst [smem:[#allocation21_spill]] %s1651_s5 }
   0x5   :  { %1672 = sst [smem:[#allocation22_spill]] %s1652_s6 }
   0x6   :  { %11 = vsyncpa [#allocation3], 0 }
   0x7   :  { %13 = vsyncpa [#allocation3 + $0x1], 0 }
   0x8   :  { %14 = vsyncpa [#allocation5], 0 }
   0x9   :  { %16 = vsyncpa [#allocation5 + $0x1], 0  ;;  %s1312_s21 = smov 0   ;;  %s1314_s22 = smov 0  }
   0xa   :  { %s1316_s23 = smov 0   ;;  %s1318_s24 = smov 0  }
   0xb   :  { %s1320_s25 = smov 0   ;;  %s1322_s26 = smov 0  }
   0xc   :  { %s1324_s27 = smov 0   ;;  %s1326_s28 = smov 0  }
   0xd   :  { %s1328_s29 = smov 0   ;;  %s1330_s30 = smov 0  }
   0xe   :  { %s1332_s7 = smov 0   ;;  %s1334_s8 = smov 0  }
   0xf   :  { %s1336_s9 = smov 0   ;;  %s1338_s10 = smov 0  }
  0x10 LB: > { %1673 = sst [smem:[#allocation11_spill]] %s1245_s29  ;;  %s1381_s11 = sadd.s32 4294967295, %s1265_s10   ;;  %s1265_s10 = sphi %s1338_s10, %s22_s10   ;;  %s1261_s9 = sphi %s1336_s9, %s1732_s9   ;;  %s1257_s8 = sphi %s1334_s8, %s1731_s8   ;;  %s1253_s7 = sphi %s1332_s7, %s1730_s7   ;;  %s1249_s30 = sphi %s1330_s30, %s1729_s30   ;;  %s1245_s29 = sphi %s1328_s29, %s1717_s29   ;;  %s1241_s28 = sphi %s1326_s28, %s1728_s28   ;;  %s1237_s27 = sphi %s1324_s27, %s1727_s27   ;;  %s1233_s26 = sphi %s1322_s26, %s1726_s26   ;;  %s1229_s25 = sphi %s1320_s25, %s1725_s25   ;;  %s1225_s24 = sphi %s1318_s24, %s1724_s24   ;;  %s1221_s23 = sphi %s1316_s23, %s1723_s23   ;;  %s1217_s22 = sphi %s1314_s22, %s1722_s22   ;;  %s1213_s21 = sphi %s1312_s21, %s1721_s21  }
  0x11   : > { %1674 = sst [smem:[#allocation12_spill]] %s1249_s30  ;;  %s31_s12 = sadd.s32 1, %s1257_s8 }
  0x12   : > { %1675 = sst [smem:[#allocation13_spill]] %s1253_s7  ;;  %p32_p0 = scmp.ge.s32.totalorder %s31_s12, 2 }
  0x13   : > { %s34_s13 = sadd.s32 1, %s1261_s9  ;;  %p1662_p1 = scmp.eq.s32.totalorder %s1265_s10, 0 }
  0x14   : > { %p1660_p2 = scmp.eq.s32.totalorder %s1381_s11, 0  ;;  %s1734_s12 = smov (%p32_p0, %s31_s12), 0 }
  0x15   : > { %1676 = sst [smem:[#allocation14_spill]] %s1734_s12  ;;  %s1736_s13 = smov (!%p32_p0, %s34_s13), %s1261_s9 }
  0x16   : > { %s39_s14 = ssub.s32 %s1257_s8, %s1734_s12  ;;  %p36_p3 = scmp.ge.s32.totalorder %s1736_s13, 2 }
  0x17   : > { %s77_s15 = sadd.s32 1, %s1233_s26  ;;  %p84_p4 = scmp.ne.s32.totalorder %s1233_s26, %s1229_s25 }
  0x18   : > { %s1738_s13 = smov (%p36_p3, %s1736_s13), 0  ;;  %p90_p6 = scmp.ne.s32.totalorder %s1229_s25, %s1225_s24 }
  0x19   : > { %1677 = sst [smem:[#allocation15_spill]] %s1738_s13  ;;  %s1397_s16 = ssub.s32 %s1261_s9, %s1738_s13 }
  0x1a   : > { %s1400_s17 = sor.u32 %s39_s14, %s1397_s16  ;;  %p1408_p7 = por %p84_p4, %p1662_p1 }
  0x1b   : > { %p1414_p8 = por %p90_p6, %p1660_p2  ;;  %p1661_p9 = scmp.lt.s32.totalorder %s1265_s10, 4 }
  0x1c   : > { %p1659_p10 = scmp.eq.s32.totalorder %s1397_s16, 0  ;;  %s876_s20 = sshll.u32 %s1261_s9, 1 }
  0x1d   : > { %s1679_s19 = scalar_select %p1414_p8, 1, 0 }
  0x1e   : > { %s268_s14 = sand.u32 1, %s1265_s10   ;;  %s270_s13 = sand.u32 1, %s1233_s26  }
  0x1f   : > { %1680 = sst [smem:[#allocation16_spill]] %s1679_s19  ;;  %s878_s12 = sshll.u32 %s270_s13, 2 }
  0x20   : > { %s1426_s24 = scalar_select %p1659_p10, %s1233_s26, %s77_s15  }
  0x21   : > { %s1664_s6 = sshll.u32 %s1261_s9, 7  ;;  %s272_s7 = scalar_lea.vmem [#allocation4], %s878_s12 }
  0x22   : > { %s284_s5 = sshll.u32 %s272_s7, 4  ;;  %s1681_s1 = sld [smem:[#allocation18_spill]]  ;;  %s285_s5 = int_to_ptr.vmem [resolvable:$true] %s284_s5 }
  0x23   : > { %p1438_p11 = pnand %p1661_p9, %p1408_p7  ;;  %s1444_s15 = scalar_lea.sflag [#allocation5], %s268_s14 }
  0x25   : > { %p1057_p3 = pneg %p1438_p11 }
  0x28   : > { %s282_s30 = scalar_lea.hbm %s1681_s1, %s1664_s6 }
  0x29   : > { %s1055_s13 = scalar_lea.hbm %s282_s30, 64  ;;  %p1061_p10 = scmp.lt.s32.totalorder %s282_s30, %s1681_s1 }
  0x2a   : > { %p1056_p0 = scmp.ne.s32.totalorder %s282_s30, %s1055_s13 }
  0x2c   : > { %p1058_p4 = pnand %p1057_p3, %p1056_p0 }
  0x2e   : > { %p1059_p6 = pneg %p1058_p4 }
  0x30   : > { %p1064_p2 = pnand %p1061_p10, %p1059_p6 }
  0x32   : > { %1067 = shalt.err (!%p1064_p2)
}
  0x33   : > { %s1068_s7 = scalar_lea.vmem %s285_s5, 64  ;;  %s1267_s12 = smov [#allocation4]  }
  0x34   : > { %p1069_p7 = scmp.ne.s32.totalorder %s285_s5, %s1068_s7  ;;  %s1073_s18 = sshll.u32 %s1267_s12, 4  ;;  %s1074_s18 = int_to_ptr.vmem [resolvable:$false] %s1073_s18 }
  0x35   : > { %s1075_s14 = scalar_lea.vmem %s1074_s18, 128  ;;  %p1076_p5 = scmp.lt.s32.totalorder %s285_s5, %s1074_s18 }
  0x36   : > { %p1071_p9 = pnand %p1069_p7, %p1057_p3  ;;  %p1077_p12 = scmp.lt.s32.totalorder %s1075_s14, %s1068_s7 }
  0x38   : > { %p1072_p1 = pneg %p1071_p9  ;;  %p1078_p13 = por %p1077_p12, %p1076_p5 }
  0x3a   : > { %p1079_p8 = pnand %p1078_p13, %p1072_p1 }
  0x3c   : > { %1082 = shalt.err (!%p1079_p8)
}
  0x3d   : > { %915 = dma.hbm_to_vmem [thread:$0]  (!%p1438_p11), %s282_s30, 64, %s285_s5, %s1444_s15  }
  0x3e   : > { %p1683_p1 = scmp.lt.s32.totalorder %s1265_s10, 5  ;;  %p1684_p2 = scmp.ge.s32.totalorder %s1265_s10, 1 }
  0x3f   : > { %s43_s13 = sadd.s32 1, %s1245_s29  ;;  %p1686_p8 = scmp.eq.s32.totalorder %s1400_s17, 0 }
  0x40   : > { %p1458_p5 = pnand %p1684_p2, %p1683_p1  ;;  %p50_p9 = scmp.ne.s32.totalorder %s1245_s29, %s1241_s28 }
  0x41   : > { %s1466_s3 = scalar_select %p1686_p8, %s1245_s29, %s43_s13  }
  0x42   : > { %p56_p10 = scmp.ne.s32.totalorder %s1241_s28, %s1237_s27  ;;  %p213_p12 = scmp.eq.s32.totalorder %s1381_s11, 3 }
  0x43   : > { %1687 = sst [smem:[#allocation17_spill]] %s1466_s3  ;;  %s248_s4 = sand.u32 1, %s1245_s29  }
  0x44   : > { %p1688_p13 = scmp.eq.s32.totalorder %s1265_s10, 0  ;;  %p1689_p3 = scmp.eq.s32.totalorder %s1381_s11, 0 }
  0x45   : > { %p1482_p11 = por %p213_p12, %p50_p9  ;;  %s875_s7 = sshll.u32 %s248_s4, 2 }
  0x46   : > { %p52_p0 = por %p1688_p13, %p50_p9  ;;  %p1478_p4 = por %p1689_p3, %p56_p10 }
  0x47   : > { %s1691_s30 = scalar_select %p1482_p11, 1, 0 }
  0x48   : > { %s1690_s5 = scalar_select %p1478_p4, 1, 0 }
  0x49   : > { %s257_s17 = sadd.s32 %s1257_s8, %s876_s20  ;;  %s252_s13 = scalar_lea.vmem [#allocation2], %s875_s7 }
  0x4a   : > { %s877_s12 = sshll.u32 %s257_s17, 6  ;;  %s261_s6 = sshll.u32 %s252_s13, 4  ;;  %s262_s6 = int_to_ptr.vmem [resolvable:$true] %s261_s6 }
  0x4b   : > { %s259_s27 = scalar_lea.hbm %s1646_s0, %s877_s12  ;;  %p1692_p6 = scmp.lt.s32.totalorder %s1265_s10, 4 }
  0x4c   : > { %s249_s3 = scalar_lea.sflag [#allocation3], %s248_s4  ;;  %s1096_s29 = scalar_lea.vmem %s262_s6, 64 }
  0x4d   : > { %p1494_p7 = pnand %p1692_p6, %p52_p0  ;;  %p1097_p2 = scmp.ne.s32.totalorder %s262_s6, %s1096_s29 }
  0x4e   : > { %s1268_s20 = smov [#allocation2]  }
  0x4f   : > { %p1085_p1 = pneg %p1494_p7  ;;  %s1101_s17 = sshll.u32 %s1268_s20, 4  ;;  %s1102_s17 = int_to_ptr.vmem [resolvable:$false] %s1101_s17 }
  0x50   : > { %s1103_s12 = scalar_lea.vmem %s1102_s17, 128  ;;  %p1104_p10 = scmp.lt.s32.totalorder %s262_s6, %s1102_s17 }
  0x51   : > { %p1099_p8 = pnand %p1097_p2, %p1085_p1  ;;  %p1105_p12 = scmp.lt.s32.totalorder %s1103_s12, %s1096_s29 }
  0x53   : > { %p1100_p9 = pneg %p1099_p8  ;;  %p1106_p13 = por %p1105_p12, %p1104_p10 }
  0x55   : > { %p1107_p3 = pnand %p1106_p13, %p1100_p9 }
  0x57   : > { %1110 = shalt.err (!%p1107_p3)
}
  0x58   : > { %912 = dma.hbm_to_vmem [thread:$0]  (!%p1494_p7), %s259_s27, 64, %s262_s6, %s249_s3  }
  0x59   : > { %s111_s4 = sadd.s32 1, %s1221_s23  ;;  %p118_p0 = scmp.ne.s32.totalorder %s1221_s23, %s1217_s22 }
  0x5a   : > { %p124_p6 = scmp.ne.s32.totalorder %s1217_s22, %s1213_s21  ;;  %s293_s29 = sand.u32 1, %s1221_s23  }
  0x5b   : > { %p1694_p1 = scmp.eq.s32.totalorder %s1265_s10, 0  ;;  %p1695_p8 = scmp.eq.s32.totalorder %s1381_s11, 0 }
  0x5c   : > { %s882_s7 = sshll.u32 %s293_s29, 2  ;;  %s1697_s18 = sshll.u32 %s1261_s9, 7 }
  0x5d   : > { %p120_p2 = por %p118_p0, %p1694_p1  ;;  %p1512_p9 = por %p124_p6, %p1695_p8 }
  0x5e   : > { %s1209_s14 = sadd.s32 64, %s1697_s18  ;;  %s295_s13 = scalar_lea.vmem [#allocation6], %s882_s7 }
  0x5f   : > { %s1696_s1 = scalar_select %p1512_p9, 1, 0 }
  0x60   : > { %s307_s20 = sshll.u32 %s295_s13, 4  ;;  %p1698_p10 = scmp.eq.s32.totalorder %s1397_s16, 0  ;;  %s308_s20 = int_to_ptr.vmem [resolvable:$true] %s307_s20 }
  0x61   : > { %s305_s21 = scalar_lea.hbm %s1648_s2, %s1209_s14  ;;  %p1699_p7 = scmp.lt.s32.totalorder %s1265_s10, 4 }
  0x62   : > { %s1521_s17 = scalar_select %p1698_p10, %s1221_s23, %s111_s4  }
  0x63   : > { %p1528_p12 = pnand %p1699_p7, %p120_p2  ;;  %s1111_s12 = scalar_lea.hbm %s305_s21, 64 }
  0x64   : > { %p1112_p13 = scmp.ne.s32.totalorder %s305_s21, %s1111_s12  ;;  %s1116_s29 = scalar_lea.hbm %s1648_s2, 256 }
  0x65   : > { %p1113_p3 = pneg %p1528_p12  ;;  %p1118_p1 = scmp.lt.s32.totalorder %s1116_s29, %s1111_s12 }
  0x67   : > { %p1114_p0 = pnand %p1113_p3, %p1112_p13 }
  0x69   : > { %p1115_p6 = pneg %p1114_p0 }
  0x6b   : > { %p1120_p8 = pnand %p1118_p1, %p1115_p6 }
  0x6d   : > { %1123 = shalt.err (!%p1120_p8)
}
  0x6e   : > { %s1124_s7 = scalar_lea.vmem %s308_s20, 64  ;;  %s1269_s18 = smov [#allocation6]  }
  0x6f   : > { %p1125_p10 = scmp.ne.s32.totalorder %s308_s20, %s1124_s7  ;;  %s1129_s14 = sshll.u32 %s1269_s18, 4  ;;  %s1130_s14 = int_to_ptr.vmem [resolvable:$false] %s1129_s14 }
  0x70   : > { %s1131_s13 = scalar_lea.vmem %s1130_s14, 128  ;;  %p1132_p11 = scmp.lt.s32.totalorder %s308_s20, %s1130_s14 }
  0x71   : > { %p1127_p2 = pnand %p1125_p10, %p1113_p3  ;;  %p1133_p9 = scmp.lt.s32.totalorder %s1131_s13, %s1124_s7 }
  0x73   : > { %p1128_p7 = pneg %p1127_p2  ;;  %p1134_p4 = por %p1133_p9, %p1132_p11 }
  0x75   : > { %p1135_p13 = pnand %p1134_p4, %p1128_p7 }
  0x77   : > { %1138 = shalt.err (!%p1135_p13)
}
  0x78   : > { %918 = dma.hbm_to_vmem [thread:$0]  (!%p1528_p12), %s305_s21, 64, %s308_s20, %s1444_s15  }
  0x79   : > { %316 = sbr.rel (%p1458_p5) target bundleno = 1095 (0x447), region = 44  ;;  %s1543_s6 = sand.u32 (!%p1458_p5), 1, %s1241_s28  }
  0x7a   : > { %s886_s3 = sshll.u32 (!%p1458_p5), %s1543_s6, 2  ;;  %s319_s12 = scalar_lea.sflag (!%p1458_p5), [#allocation3], %s1543_s6 }
  0x7b   : > { %s322_s16 = scalar_lea.vmem (!%p1458_p5), [#allocation2], %s886_s3  ;;  %p1701_p3 = scmp.ne.s32.totalorder (!%p1458_p5), %s1690_s5, 0 }
  0x7e   : > { %1196 = dma.done.wait (%p1701_p3), %s319_s12, 64  }
  0x7f   : > { %1198 = vsyncadd (%p1701_p3), %s319_s12, 4294967232  ;;  %s1702_s15 = sld [smem:[#allocation16_spill]]  ;;  %s327_s20 = sand.u32 1, %s1381_s11  }
  0x80   : > { %s329_s19 = sand.u32 1, %s1229_s25   ;;  %s328_s27 = scalar_lea.sflag [#allocation5], %s327_s20 }
  0x81   : > { %s887_s21 = sshll.u32 %s329_s19, 2 }
  0x82   : > { %s331_s4 = scalar_lea.vmem [#allocation4], %s887_s21 }
  0x85   : > { %p1703_p5 = scmp.ne.s32.totalorder %s1702_s15, 0 }
  0x87   : > { %1200 = dma.done.wait (%p1703_p5), %s328_s27, 64  }
  0x88   : > { %1202 = vsyncadd (%p1703_p5), %s328_s27, 4294967232  ;;  %s338_s29 = sand.u32 1, %s1217_s22   ;;  %p1704_p4 = scmp.ne.s32.totalorder %s1696_s1, 0 }
  0x89   : > { %s888_s7 = sshll.u32 %s338_s29, 2 }
  0x8a   : > { %s340_s18 = scalar_lea.vmem [#allocation6], %s888_s7 }
  0x8b   : > { %1204 = dma.done.wait (%p1704_p4), %s328_s27, 64  }
  0x8c   : > { %1206 = vsyncadd (%p1704_p4), %s328_s27, 4294967232  ;;  %s1705_s11 = sld [smem:[#allocation12_spill]]  ;;  %v1270_v0 = vmov 0   ;;  %v1572_v3 = vld [vmem:[%s322_s16] sm:$0xf]  ;;  %s1271_s16 = smov 16   ;;  %v434_v34 = vlaneseq }
  0x8d   : > { %1039 = vset.pattern.permute.xlu0 %v1270_v0  ;;  %571 = vmatprep.mubr.bf16.mxu0 %v1270_v0  ;;  %s1706_s13 = sld [smem:[#allocation19_spill]]  ;;  %v401_v4 = vld [vmem:[%s331_s4] sm:$0xf]  ;;  %v405_v6 = vld [vmem:[%s340_s18] sm:$0xf]  ;;  %vm431_vm2 = vcmask 130048  }
  0x8e   : > { %616 = vmatprep.mubr.bf16.mxu1 %v1270_v0  ;;  %s1707_s15 = sld [smem:[#allocation20_spill]]  ;;  %s1272_s19 = smov 32   ;;  %vm461_vm3 = vcmask 1047808   ;;  %v435_v35 = vand.u32 127, %v434_v34  ;;  %vm501_vm4 = vcmask 1039360   ;;  %vm480_vm8 = vcmask 793600  }
  0x8f   : > { %s1273_s21 = smov 127   ;;  %s1274_s27 = smov 97   ;;  %vm517_vm10 = vcmask 1041408   ;;  %vm524_vm11 = vcmask 1043456   ;;  %vm534_vm12 = vcmask 1045504   ;;  %vm530_vm13 = vcmask 97280  }
  0x90   : > { %v436_v36 = vadd.s32 128, %v435_v35  ;;  %v441_v39 = vand.u32 15, %v435_v35  ;;  %s1708_s7 = sld [smem:[#allocation21_spill]]  ;;  %s1275_s3 = smov 112   ;;  %vm631_vm14 = vcmask 916480   ;;  %vm687_vm15 = vcmask 785408  }
  0x91   : > { %s1276_s12 = smov 96   ;;  %p1710_p12 = scmp.ne.s32.totalorder %s1691_s30, 0 }
  0x92   : > { %p409_p11 = scmp.gt.s32.totalorder %s1705_s11, 0  ;;  %p414_p9 = scmp.lt.s32.totalorder %s1705_s11, 1  ;;  %v448_v38 = vand.u32 15, %v436_v36  ;;  %vm490_vm6 = vcmp.lt.s32.totalorder %v441_v39, 15  ;;  %vm468_vm9 = vcmp.ge.s32.totalorder %v441_v39, 1 }
  0x93   : > { %v385_v1 = vld [vmem:[%s1706_s13] sm:$0xf]  ;;  %s1713_s29 = sld [smem:[#allocation22_spill]] (%p1710_p12) }
  0x94   : > { %390 = vperm.xlu0 %1039, %v385_v1   ;;  %v386_v2 = vld [vmem:[%s1707_s15] sm:$0xf]  ;;  %s410_s1 = scalar_select %p409_p11, 1, 0  ;;  %vm491_vm5 = vcmp.lt.s32.totalorder %v448_v38, 15  ;;  %vm469_vm7 = vcmp.ge.s32.totalorder %v448_v38, 1 }
  0x95   : > { %s415_s20 = scalar_select %p414_p9, 1, 0 }
  0x96   : > { %v411_v9 = vstv %s410_s1  ;;  %s1709_s18 = smov %s1708_s7  ;;  %s889_s15 = sshll.u32 %s1543_s6, 4 }
  0x97   : > { %vm412_vm0 = vcmp.eq.s32.totalorder %v411_v9, 1  ;;  %v416_v18 = vstv %s415_s20  ;;  %s377_s1 = scalar_lea.vmem [#allocation7], %s889_s15  ;;  %s1711_s20 = sld [smem:[#allocation13_spill]] (%p1710_p12) }
  0x98   : > { %396 = vperm.xlu0 %1039, %v386_v2   ;;  %vm417_vm1 = vcmp.eq.s32.totalorder %v416_v18, 1 }
 0x10f   : > { %v391_v5 = vpop.permute.xlu0 %390 }
 0x110   : > { %v393_v7 = vmul.f32 %v391_v5, %v1572_v3  ;;  %v402_v8 = vmul.f32 %v401_v4, %v391_v5  ;;  %v406_v11 = vmul.f32 %v405_v6, %v391_v5  ;;  %v529_v4 = vld [vmem:[%s1708_s7] sm:$0xf]  ;;  %v892_v5 = vld [vmem:[%s1709_s18 + $0x4] sm:$0xf]  ;;  %v895_v6 = vld [vmem:[%s1709_s18 + $0x8] sm:$0xf] }
 0x113   : > { %v397_v10 = vpop.permute.xlu0 %396 }
 0x114   : > { %v399_v12 = vadd.f32 %v397_v10, %v393_v7  ;;  %v403_v13 = vadd.f32 %v402_v8, %v397_v10  ;;  %v407_v15 = vadd.f32 %v406_v11, %v397_v10 }
 0x116   : > { %v404_v14 = vmax.f32 %v403_v13, 0.0  ;;  %v400_v16 = vmax.f32 %v399_v12, 0.0  ;;  %v408_v20 = vmax.f32 %v407_v15, 0.0 }
 0x118   : > { %v413_v17 = vsel %vm412_vm0, %v404_v14, 0.0  ;;  %v418_v21 = vsel %vm417_vm1, %v408_v20, 0.0 }
 0x119   : > { %v1040_v19 = vpack.i.bf16 %v400_v16, %v413_v17 }
 0x11b   : > { %1041 = vrot.lane.b32.xlu1 %v1040_v19, %s1271_s16 }
 0x11f   : > { %428 = vrot.lane.b32.xlu1 %v418_v21, %s1271_s16  ;;  %s1712_s16 = sld [smem:[#allocation12_spill]] (%p1710_p12) }
 0x18d   : > { %v1042_v22 = vpop.permute.xlu1 %1041 }
 0x18e   : > { %v1044_v23 = vunpack.i.h.bf16 %v1042_v22  ;;  %v1043_v24 = vunpack.i.l.bf16 %v1042_v22 }
 0x190   : > { %v432_v25 = vsel %vm431_vm2, %v1043_v24, %v1044_v23 }
 0x191   : > { %v429_v26 = vpop.permute.xlu1 %428  ;;  %462 = vrot.lane.b32.xlu0 %v432_v25, %s1272_s19  ;;  %v488_v46 = vpack.c.bf16 %v432_v25, %v432_v25 }
 0x192   : > { %v433_v27 = vsel %vm431_vm2, %v1044_v23, %v429_v26 }
 0x193   : > { %v489_v45 = vpack.c.bf16 %v433_v27, %v433_v27  ;;  %v511_v57 = vrot.slane %v488_v46, 6 }
 0x195   : > { %v512_v54 = vrot.slane %v489_v45, 6 }
 0x203   : > { %v463_v28 = vpop.permute.xlu0 %462 }
 0x204   : > { %v464_v29 = vsel %vm461_vm3, %v463_v28, %v433_v27 }
 0x205   : > { %465 = vrot.lane.b32.xlu1 %v464_v29, %s1272_s19  ;;  %v1045_v30 = vpack.i.bf16 %v464_v29, %v432_v25  ;;  %s899_s19 = sshll.u32 (%p1710_p12), %s1711_s20, 2 }
 0x207   : > { %1046 = vrot.lane.b32.xlu0 %v1045_v30, %s1273_s21  ;;  %s705_s21 = sadd.s32 (%p1710_p12), %s1712_s16, %s899_s19 }
 0x208   : > { %s900_s6 = sshll.u32 (%p1710_p12), %s705_s21, 3 }
 0x209   : > { %s707_s7 = scalar_lea.vmem (%p1710_p12), %s1713_s29, %s900_s6 }
 0x277   : > { %v466_v31 = vpop.permute.xlu1 %465 }
 0x278   : > { %v467_v32 = vsel %vm461_vm3, %v466_v31, %v463_v28 }
 0x279   : > { %v1050_v33 = vpack.i.bf16 %v467_v32, %v464_v29  ;;  %v1047_v37 = vpop.permute.xlu0 %1046 }
 0x27a   : > { %v1049_v40 = vunpack.i.h.bf16 %v1047_v37  ;;  %v1048_v41 = vunpack.i.l.bf16 %v1047_v37 }
 0x27b   : > { %1051 = vrot.lane.b32.xlu1 %v1050_v33, %s1274_s27 }
 0x27c   : > { %v502_v42 = vsel %vm501_vm4, %v1048_v41, %v1049_v40  ;;  %v506_v43 = vsel %vm491_vm5, %v1049_v40, 0.0 }
 0x27d   : > { %v505_v44 = vsel %vm490_vm6, %v502_v42, 0.0  ;;  %v508_v48 = vpack.c.bf16 %v506_v43, %v506_v43 }
 0x27e   : > { %v507_v51 = vpack.c.bf16 %v505_v44, %v505_v44 }
 0x27f   : > { %v516_v58 = vrot.slane %v508_v48, 4 }
 0x280   : > { %v515_v61 = vrot.slane %v507_v51, 4 }
 0x2ed   : > { %v1052_v47 = vpop.permute.xlu1 %1051 }
 0x2ee   : > { %v1054_v49 = vunpack.i.h.bf16 %v1052_v47  ;;  %v1053_v50 = vunpack.i.l.bf16 %v1052_v47 }
 0x2f0   : > { %v485_v52 = vsel %vm469_vm7, %v1054_v49, 0.0  ;;  %v481_v53 = vsel %vm480_vm8, %v1053_v50, %v1054_v49 }
 0x2f1   : > { %v487_v55 = vpack.c.bf16 %v485_v52, %v485_v52  ;;  %v484_v56 = vsel %vm468_vm9, %v481_v53, 0.0 }
 0x2f2   : > { %v486_v59 = vpack.c.bf16 %v484_v56, %v484_v56 }
 0x2f3   : > { %v523_v60 = vsel %vm517_vm10, %v487_v55, %v512_v54 }
 0x2f4   : > { %v528_v62 = vsel %vm524_vm11, %v523_v60, %v516_v58  ;;  %v520_v63 = vsel %vm517_vm10, %v486_v59, %v511_v57 }
 0x2f5   : > { %890 = vmatprep.subr.msk.bf16.mxu0 %vm534_vm12, %v528_v62  ;;  %893 = vmatprep.subr.msk.bf16.mxu1 %vm534_vm12, %v528_v62  ;;  %v526_v1 = vsel %vm524_vm11, %v520_v63, %v515_v61 }
 0x2f6   : > { %v535_v2 = vsel %vm534_vm12, %v526_v1, 0 }
 0x2f7   : > { %554 = vmatpush1.bf16.msra.mxu0 %v535_v2  ;;  %599 = vmatpush1.bf16.msra.mxu1 %v535_v2 }
 0x2f8   : > { %896 = vmatprep.subr.msk.bf16.mxu0 %vm534_vm12, %v528_v62 }
 0x2fa   : > { %891 = vmatmul.mubr.msk.bf16.vlgmr.msra.gmra.mxu0 %vm530_vm13, %v529_v4  ;;  %894 = vmatmul.mubr.msk.bf16.vlgmr.msra.gmra.mxu1 %vm530_vm13, %v892_v5 }
 0x2fb   : > { %655 = vmatpush1.bf16.msra.mxu0 %v535_v2  ;;  %672 = vmatprep.mubr.bf16.mxu0 %v1270_v0 }
 0x302   : > { %897 = vmatmul.mubr.msk.bf16.vlgmr.msra.gmra.mxu0 %vm530_vm13, %v895_v6 }
 0x3ba   : > { %v573_v7 = vpop.f32.mrf.mxu0  ;;  %v618_v8 = vpop.f32.mrf.mxu1 }
 0x3bb   : > { %627 = vrot.lane.b32.xlu0 %v618_v8, %s1275_s3 }
 0x3bc   : > { %v575_v9 = vpop.f32.mrf.mxu0  ;;  %v620_v10 = vpop.f32.mrf.mxu1 }
 0x3bd   : > { %629 = vrot.lane.b32.xlu1 %v620_v10, %s1275_s3 }
 0x3be   : > { %v576_v11 = vpop.f32.mrf.mxu0  ;;  %v622_v12 = vpop.f32.mrf.mxu1 }
 0x3c0   : > { %v577_v13 = vpop.f32.mrf.mxu0  ;;  %v623_v14 = vpop.f32.mrf.mxu1 }
 0x3c2   : > { %v674_v15 = vpop.f32.mrf.mxu0 }
 0x3c3   : > { %683 = vrot.lane.b32.xlu0 %v674_v15, %s1276_s12 }
 0x3c4   : > { %v676_v0 = vpop.f32.mrf.mxu0 }
 0x3c5   : > { %685 = vrot.lane.b32.xlu1 %v676_v0, %s1276_s12 }
 0x3c6   : > { %v678_v16 = vpop.f32.mrf.mxu0 }
 0x3c8   : > { %v679_v17 = vpop.f32.mrf.mxu0 }
 0x42d   : > { %v628_v18 = vpop.permute.xlu0 %627 }
 0x42f   : > { %v630_v19 = vpop.permute.xlu1 %629 }
 0x430   : > { %v632_v20 = vsel %vm631_vm14, %v628_v18, %v630_v19 }
 0x431   : > { %v634_v21 = vadd.f32 %v632_v20, %v573_v7 }
 0x435   : > { %v684_v22 = vpop.permute.xlu0 %683 }
 0x437   : > { %v686_v23 = vpop.permute.xlu1 %685 }
 0x438   : > { %v688_v24 = vsel %vm687_vm15, %v684_v22, %v686_v23 }
 0x439   : > { %v690_v25 = vadd.f32 %v688_v24, %v634_v21 }
 0x43a   : > { %703 = sbr.rel (!%p1710_p12) target bundleno = 1095 (0x447), region = 60 }
 0x43b   : > { %v692_v26 = vrot.slane %v690_v25, 4 }
 0x43d   : > { %v694_v27 = vsel %vm524_vm11, %v1572_v3, %v692_v26  ;;  %696 = vst [vmem:[%s377_s1 + $0x8] sm:$0xf] %v692_v26 }
 0x43e   : > { %695 = vst [vmem:[%s377_s1] sm:$0xff] %v694_v27 }
 0x444   : > { %v740_v29 = vld [vmem:[%s377_s1 + $0x8] sm:$0xff] }
 0x445   : > { %v738_v28 = vld [vmem:[%s377_s1] sm:$0xff]  ;;  %741 = vst [vmem:[%s707_s7 + $0x10] sm:$0xff] %v740_v29 }
 0x446   : > { %739 = vst [vmem:[%s707_s7] sm:$0xff] %v738_v28 }
 0x447 PF: > { %s22_s10 = sadd.s32 1, %s1265_s10   ;;  %s1715_s11 = smov %s1426_s24 }
 0x448   : > { %p1599_p0 = scmp.ge.s32.totalorder %s22_s10, 6   ;;  %s1716_s5 = sld [smem:[#allocation11_spill]] }
 0x449   : > { %s1717_s29 = sld [smem:[#allocation17_spill]]  ;;  %s1721_s21 = smov %s1217_s22 }
 0x44a   : > { %s1718_s14 = sld [smem:[#allocation14_spill]]  ;;  %s1722_s22 = smov %s1221_s23 }
 0x44b   : > { %s1719_s13 = sld [smem:[#allocation15_spill]]  ;;  %s1723_s23 = smov %s1521_s17 }
 0x44c   : > { %s1724_s24 = smov %s1229_s25  ;;  %s1725_s25 = smov %s1233_s26 }
 0x44d   : > { %s1726_s26 = smov %s1715_s11  ;;  %s1727_s27 = smov %s1241_s28 }
 0x44e   : > { %s1728_s28 = smov %s1716_s5  ;;  %s1729_s30 = smov %s1257_s8 }
 0x44f   : > { %s1730_s7 = smov %s1261_s9  ;;  %21 = sbr.rel (!%p1599_p0) target bundleno = 16 (0x10), region = 148 }
 0x450   : > { %s1731_s8 = smov %s1718_s14 }
 0x451   : > { %s1732_s9 = smov %s1719_s13 }
 0x454   :  { %757 = vsyncpa [#allocation3], 1 }
 0x455   :  { %759 = vsyncpa [#allocation3 + $0x1], 1 }
 0x456   :  { %760 = vsyncpa [#allocation5], 1 }
 0x457   :  { %762 = vsyncpa [#allocation5 + $0x1], 1 }

</bundles_post_ra>
